<compile_context>
chip_gen: v7x
topology: tpu7x:2x2x1
jax: 0.10.0
libtpu: 0.0.40
codegen_flags: <defaults>
</compile_context>

<pallas_src>
import functools

import numpy as np
import jax
import jax.numpy as jnp
from jax.experimental import pallas as pl
from jax.experimental.pallas import tpu as pltpu


def _round_up(x, m):
    return (x + m - 1) // m * m


def _stage_table(in_c, out_c):
    # (name, Cin, Cout, central_masked) following ProjLayer.forward order.
    return [("mc1", in_c, in_c // 2, True),
            ("mc2", in_c // 2, in_c, True),
            ("conv1", in_c, in_c // 2, False),
            ("conv2", in_c // 2, in_c // 4, False),
            ("conv3", in_c // 4, in_c // 2, False),
            ("conv4", in_c // 2, out_c, False)]


# --------------------------------------------------------------------------- #
# Kernel
# --------------------------------------------------------------------------- #
def _proj_layer_kernel(x_ref, w_ref, mask_ref, o_ref, *,
                       Wp, out_c, hw, stages_masked, eps, slope, roll_like_np):
    """One batch sample: 6 x (conv3x3(pad=1) -> InstanceNorm -> LeakyReLU).

    x_ref:    (cmax, Ppad)      channel-major activation on the zero-padded,
                                flattened spatial grid (halo/tail/extra ch = 0).
    w_ref:    (6, 9, cmax, cmax) per-stage, per-tap (cout, cin) weights,
                                zero-padded; central tap pre-masked for mc1/mc2.
    mask_ref: (1, Ppad)         1.0 on interior (valid) pixels, 0.0 elsewhere.
    o_ref:    (out_c, Ppad)     last-stage activation, lane-dense store.
    """
    ppad = x_ref.shape[-1]
    mask = mask_ref[...]
    inv_hw = 1.0 / hw
    cur = x_ref[...]                                          # (cmax, Ppad)

    for s in range(len(stages_masked)):
        acc = None
        for ky in range(3):
            for kx in range(3):
                tap = ky * 3 + kx
                if stages_masked[s] and tap == 4:             # masked central tap
                    continue
                # Interior output pixel q needs the input at q + d on the
                # padded, flattened grid.
                d = (ky - 1) * Wp + (kx - 1)
                if d == 0:
                    shifted = cur
                else:
                    amount = (-d) % ppad if roll_like_np else d % ppad
                    shifted = pltpu.roll(cur, amount, 1)      # lane shift (XLU)
                term = jax.lax.dot_general(
                    w_ref[s, tap], shifted,                   # (co,ci) @ (ci,Ppad)
                    (((1,), (0,)), ((), ())),
                    preferred_element_type=jnp.float32)
                acc = term if acc is None else acc + term

        # InstanceNorm2d(affine=False): per-channel stats over the hw valid
        # pixels only, single fused pass.  Conv bias is omitted: it is exactly
        # cancelled by the mean subtraction.
        acc_m = acc * mask
        mean = jnp.sum(acc_m, axis=1, keepdims=True) * inv_hw
        var = jnp.sum(acc_m * acc_m, axis=1, keepdims=True) * inv_hw - mean * mean
        y = (acc - mean) * jax.lax.rsqrt(jnp.maximum(var, 0.0) + eps)
        y = jnp.maximum(y, slope * y)                         # LeakyReLU(0.01)
        cur = y * mask                  # re-zero halo/tail => padding for next conv

    o_ref[...] = cur[:out_c, :]


# --------------------------------------------------------------------------- #
# Wrapper
# --------------------------------------------------------------------------- #
def proj_layer_forward(w_all, x_nchw, *, out_c, stages_masked, roll_like_np=True):
    """Fused ProjLayer forward.  x_nchw: (N, in_c, H, W) f32 -> (N, out_c, H, W)."""
    N, in_c, H, W = x_nchw.shape
    cmax = w_all.shape[-1]
    Hp, Wp = H + 2, W + 2
    P = Hp * Wp
    Ppad = _round_up(P, 128)

    # Channel-major, halo-padded, lane-padded input (cheap pads, NO transpose).
    xp = jnp.pad(x_nchw.astype(jnp.float32),
                 ((0, 0), (0, cmax - in_c), (1, 1), (1, 1)))
    xp = jnp.pad(xp.reshape(N, cmax, P), ((0, 0), (0, 0), (0, Ppad - P)))

    # Interior-pixel mask (trace-time constant).
    m2d = np.zeros((Hp, Wp), np.float32)
    m2d[1:1 + H, 1:1 + W] = 1.0
    mask = jnp.asarray(np.pad(m2d.reshape(1, P), ((0, 0), (0, Ppad - P))))

    kernel = functools.partial(
        _proj_layer_kernel, Wp=Wp, out_c=out_c, hw=H * W,
        stages_masked=stages_masked, eps=1e-5, slope=0.01,
        roll_like_np=roll_like_np)

    out_pad = pl.pallas_call(
        kernel,
        out_shape=jax.ShapeDtypeStruct((N, out_c, Ppad), jnp.float32),
        grid_spec=pltpu.PrefetchScalarGridSpec(
            num_scalar_prefetch=0,
            grid=(N,),
            in_specs=[
                pl.BlockSpec((pl.Squeezed(), cmax, Ppad), lambda n: (n, 0, 0)),
                pl.BlockSpec(w_all.shape, lambda n: (0, 0, 0, 0)),
                pl.BlockSpec((1, Ppad), lambda n: (0, 0)),
            ],
            out_specs=pl.BlockSpec((pl.Squeezed(), out_c, Ppad),
                                   lambda n: (n, 0, 0)),
        ),
        compiler_params=pltpu.CompilerParams(
            dimension_semantics=("parallel",),        # megacore: 1 sample / TC
            vmem_limit_bytes=32 * 1024 * 1024),
    )(xp, w_all, mask)

    # Layout plumbing only: drop the lane tail and the halo.
    return out_pad[:, :, :P].reshape(N, out_c, Hp, Wp)[:, :, 1:1 + H, 1:1 + W]


# --------------------------------------------------------------------------- #
# Parameters
# --------------------------------------------------------------------------- #
def init_proj_layer_params(key, in_c, out_c):
    """Deterministic synthetic parameters with the PyTorch module's shapes."""
    params = {}
    for name, ci, co, _ in _stage_table(in_c, out_c):
        key, kw, kb = jax.random.split(key, 3)
        params[name] = (0.1 * jax.random.normal(kw, (co, ci, 3, 3), jnp.float32),
                        0.1 * jax.random.normal(kb, (co,), jnp.float32))
    return params


def pack_proj_layer_params(params, in_c, out_c):
    """Pack once (outside jit): (6, 9, cmax, cmax) with w[s, ky*3+kx, cout, cin].

    Zero-padded to cmax, central tap zeroed for the masked convs, biases
    dropped (exactly cancelled by the affine-free InstanceNorm after each conv).
    """
    stages = _stage_table(in_c, out_c)
    cmax = max(max(ci, co) for _, ci, co, _ in stages)
    w_all = np.zeros((len(stages), 9, cmax, cmax), np.float32)
    for s, (name, ci, co, masked) in enumerate(stages):
        w = np.array(params[name][0], np.float32)             # (co, ci, 3, 3)
        if masked:
            w[:, :, 1, 1] = 0.0
        w_all[s, :, :co, :ci] = np.transpose(w, (2, 3, 0, 1)).reshape(9, co, ci)
    masked_flags = tuple(bool(st[3]) for st in stages)
    return jnp.asarray(w_all), masked_flags


# --------------------------------------------------------------------------- #
# Reference (pure XLA) and a one-off pltpu.roll direction probe
# --------------------------------------------------------------------------- #
def proj_layer_reference(params, x, in_c, out_c):
    eps, slope = 1e-5, 0.01
    h = x.astype(jnp.float32)
    for name, _ci, _co, masked in _stage_table(in_c, out_c):
        w, b = params[name]
        if masked:
            w = w.at[:, :, 1, 1].set(0.0)
        h = jax.lax.conv_general_dilated(
            h, w, (1, 1), ((1, 1), (1, 1)),
            dimension_numbers=("NCHW", "OIHW", "NCHW"),
            precision=jax.lax.Precision.HIGHEST) + b[None, :, None, None]
        m = jnp.mean(h, axis=(2, 3), keepdims=True)
        v = jnp.mean(jnp.square(h - m), axis=(2, 3), keepdims=True)
        h = (h - m) * jax.lax.rsqrt(v + eps)
        h = jnp.where(h >= 0, h, slope * h)
    return h


def _probe_roll_convention():
    """True iff pltpu.roll follows np.roll/jnp.roll direction (probed once)."""
    def k(x_ref, o_ref):
        o_ref[...] = pltpu.roll(x_ref[...], 1, 1)
    x = jax.lax.broadcasted_iota(jnp.float32, (8, 128), 1)
    y = pl.pallas_call(k, out_shape=jax.ShapeDtypeStruct((8, 128), jnp.float32))(x)
    return int(jax.device_get(y)[0, 0]) == 127


# --------------------------------------------------------------------------- #
if __name__ == "__main__":
    key = jax.random.PRNGKey(0)
    key, kx = jax.random.split(key)

    N, in_c, H, W = 2, 8, 16, 16
    out_c = 8
    x = jax.random.normal(kx, (N, in_c, H, W), dtype=jnp.float32)

    params = init_proj_layer_params(key, in_c, out_c)
    # Pre-pack weights ONCE, outside the jitted hot path.
    w_all, stages_masked = pack_proj_layer_params(params, in_c, out_c)
    roll_like_np = _probe_roll_convention()

    fwd = jax.jit(functools.partial(proj_layer_forward, out_c=out_c,
                                    stages_masked=stages_masked,
                                    roll_like_np=roll_like_np))
    out = jax.block_until_ready(fwd(w_all, x))

    assert out.shape == (N, out_c, H, W), out.shape
    assert bool(jnp.isfinite(out).all())

    ref = proj_layer_reference(params, x, in_c, out_c)
    max_err = float(jnp.max(jnp.abs(out - ref)))
    assert max_err < 1e-1, f"kernel vs reference max abs err = {max_err}"
    print("KERNEL_OK")
</pallas_src>

<mosaic_0001>
module attributes {stable_mosaic.version = 11 : i64} {
  func.func @k(%arg0: memref<8x128xf32, #tpu.memory_space<vmem>>, %arg1: memref<8x128xf32, #tpu.memory_space<vmem>>) attributes {dimension_semantics = [], scalar_prefetch = 0 : i64, scratch_operands = 0 : i64, tpu.core_type = #tpu.core_type<tc>} {
    %c0 = arith.constant 0 : index
    %c0_0 = arith.constant 0 : index
    %0 = vector.load %arg0[%c0, %c0_0] : memref<8x128xf32, #tpu.memory_space<vmem>>, vector<8x128xf32>
    %c1_i32 = arith.constant 1 : i32
    %1 = tpu.dynamic_rotate %0 by %c1_i32 dim 1 : vector<8x128xf32>, i32 -> vector<8x128xf32>
    %c0_1 = arith.constant 0 : index
    %c0_2 = arith.constant 0 : index
    %2 = vector.load %arg1[%c0_1, %c0_2] : memref<8x128xf32, #tpu.memory_space<vmem>>, vector<8x128xf32>
    tpu.vector_store %arg1[%c0_1, %c0_2], %1 {strides = array<i32>} : memref<8x128xf32, #tpu.memory_space<vmem>>, vector<8x128xf32>,
    return
  }
}

</mosaic_0001>

<bundles_post_ra>
// kernel: tpu_custom_call.1
= control target key start
LH: loop header
LB: loop body
LE: loop exit
PB: predicated region body
PF: predicated region fallthrough
CT: control target
= control target key end

     0   :  { %6 = vsyncpa [#allocation3], 0  ;;  %s128_s0 = inlined_call_operand.hbm [shape: f32[8,128], index: 0, kind: input, shape index: {}]   ;;  %s129_s1 = inlined_call_operand.hbm [shape: f32[8,128], index: 1, kind: output, shape index: {}]  }
   0x1   :  { %7 = vsyncpa [#allocation4], 0  ;;  %s91_s6 = smov [#allocation2]   ;;  %s43_s10 = scalar_lea.hbm %s128_s0, 128 }
   0x2   :  { %s14_s7 = sshll.u32 %s91_s6, 4  ;;  %p44_p0 = scmp.ne.s32.totalorder %s128_s0, %s43_s10  ;;  %s15_s7 = int_to_ptr.vmem [resolvable:$true] %s14_s7 }
   0x3   :  { %p47_p1 = scmp.lt.u32.totalorder %s43_s10, %s128_s0 }
   0x5   :  { %p49_p2 = pnand %p47_p1, %p44_p0 }
   0x7   :  { %52 = shalt.err (!%p49_p2)
}
   0x8   :  { %s53_s15 = scalar_lea.vmem %s15_s7, 128  ;;  %p58_p4 = scmp.lt.s32.totalorder %s15_s7, %s15_s7 }
   0x9   :  { %p54_p3 = scmp.ne.s32.totalorder %s15_s7, %s53_s15  ;;  %p59_p5 = scmp.lt.s32.totalorder %s53_s15, %s53_s15 }
   0xb   :  { %p60_p6 = por %p59_p5, %p58_p4 }
   0xd   :  { %p61_p7 = pnand %p60_p6, %p54_p3 }
   0xf   :  { %64 = shalt.err (!%p61_p7)
}
  0x10   :  { %17 = dma.hbm_to_vmem [thread:$0]  %s128_s0, 128, %s15_s7, [#allocation3]  }
  0x11   :  { %87 = dma.done.wait [#allocation3], 128  }
  0x12   :  { %88 = vsyncadd [#allocation3], 4294967168  ;;  %v21_v0 = vld [vmem:[#allocation2] sm:$0xff]  ;;  %s92_s18 = smov 1   ;;  %s93_s19 = smov [#allocation5]  }
  0x13   :  { %22 = vrot.lane.b32.xlu0 %v21_v0, %s92_s18  ;;  %s31_s20 = sshll.u32 %s93_s19, 4  ;;  %s32_s20 = int_to_ptr.vmem [resolvable:$true] %s31_s20 }
  0x14   :  { %s65_s21 = scalar_lea.vmem %s32_s20, 128  ;;  %p70_p9 = scmp.lt.s32.totalorder %s32_s20, %s32_s20 }
  0x15   :  { %p66_p8 = scmp.ne.s32.totalorder %s32_s20, %s65_s21  ;;  %p71_p10 = scmp.lt.s32.totalorder %s65_s21, %s65_s21 }
  0x17   :  { %p72_p11 = por %p71_p10, %p70_p9 }
  0x19   :  { %p73_p12 = pnand %p72_p11, %p66_p8 }
  0x85   :  { %v23_v1 = vpop.permute.xlu0 %22 }
  0x86   :  { %24 = vst [vmem:[#allocation5] sm:$0xff] %v23_v1 }
  0x87   :  { %76 = shalt.err (!%p73_p12)
}
  0x88   :  { %s77_s0 = scalar_lea.hbm %s129_s1, 128 }
  0x89   :  { %p78_p13 = scmp.ne.s32.totalorder %s129_s1, %s77_s0  ;;  %p81_p0 = scmp.lt.u32.totalorder %s77_s0, %s129_s1 }
  0x8b   :  { %p83_p1 = pnand %p81_p0, %p78_p13 }
  0x8d   :  { %86 = shalt.err (!%p83_p1)
}
  0x8e   :  { %34 = dma.vmem_to_hbm [thread:$0]  %s32_s20, 128, %s129_s1, [#allocation4]  }
  0x8f   :  { %89 = dma.done.wait [#allocation4], 128  }
  0x90   :  { %90 = vsyncadd [#allocation4], 4294967168 }
  0x91   :  { %38 = vsyncpa [#allocation3], 1 }
  0x92   :  { %39 = vsyncpa [#allocation4], 1 }

</bundles_post_ra>
